<compile_context>
chip_gen: v5e
topology: v5e:2x2
jax: 0.10.0
libtpu: 0.0.40
codegen_flags: <defaults>
</compile_context>

<pallas_src>
import functools

import jax
import jax.numpy as jnp
from jax import lax
from jax.experimental import pallas as pl
from jax.experimental.pallas import tpu as pltpu


def _vq_kernel(x_ref, cb_ref, cbt_ref, cbsq_ref, q_ref, idx_ref, cnt_ref, sse_ref,
               *, n_valid, masked):
    """Quantize one tile of TN flattened input rows against the full codebook."""
    step = pl.program_id(0)

    x = x_ref[...]                        # (TN, D)  input dtype
    cb = cb_ref[...]                      # (K, D)   codebook   (row-selection matmul)
    cbt = cbt_ref[...]                    # (D, K)   codebook^T (distance matmul)
    TN = x.shape[0]
    K = cb.shape[0]

    # Half squared distance up to an argmin-irrelevant per-row constant:
    #   0.5*||x - e||^2 - 0.5*||x||^2 = 0.5*||e||^2 - <x, e>
    # The 2x factor is folded into the precomputed 0.5*||e||^2 in the wrapper.
    xe = jnp.dot(x.astype(cbt.dtype), cbt,
                 preferred_element_type=jnp.float32)              # (TN, K)  MXU
    dists = cbsq_ref[...] - xe                                    # (1,K) - (TN,K)

    # argmin over codes with first-occurrence tie-break (torch.argmin semantics).
    col = lax.broadcasted_iota(jnp.int32, (TN, K), 1)
    dmin = jnp.min(dists, axis=1, keepdims=True)                  # (TN, 1)
    picked = jnp.where(dists == dmin, col, K)                     # (TN, K), K = sentinel
    idx = jnp.min(picked, axis=1, keepdims=True)                  # (TN, 1)

    # One-hot built directly from the compare with the validity mask fused in,
    # so padded/garbage rows of the edge tile contribute nothing anywhere.
    sel = col == idx                                              # (TN, K) bool
    if masked:
        row = lax.broadcasted_iota(jnp.int32, (TN, 1), 0)
        sel = jnp.logical_and(sel, (step * TN + row) < n_valid)
    onehot = sel.astype(jnp.float32)                              # (TN, K)

    # quantized = one-hot @ codebook  (exact row selection), MXU, f32 accumulation.
    q = jnp.dot(onehot.astype(cb.dtype), cb,
                preferred_element_type=jnp.float32)               # (TN, D)
    q_ref[...] = q.astype(q_ref.dtype)

    # Per-tile code counts (reduced in the wrapper -> grid axis stays "parallel").
    cnt_ref[...] = jnp.sum(onehot, axis=0, keepdims=True)         # (1, K)

    # Lane-dense per-row outputs: indices and squared error, one (1, TN) row each.
    idx_ref[...] = jnp.min(picked, axis=1)[None, :]               # (1, TN) int32

    # ||x - e_idx||^2 = 2*dmin + ||x||^2  (derived from dmin; no (TN,D) diff pass).
    xf = x.astype(jnp.float32)
    xsq = jnp.sum(xf * xf, axis=1)                                # (TN,)
    sse_row = (2.0 * jnp.min(dists, axis=1) + xsq)[None, :]       # (1, TN)
    if masked:
        lane = lax.broadcasted_iota(jnp.int32, (1, TN), 1)
        sse_row = jnp.where((step * TN + lane) < n_valid, sse_row, 0.0)
    sse_ref[...] = sse_row


@functools.partial(jax.jit, static_argnames=("commitment_cost", "tile_n"))
def vector_quantizer_forward(inputs, codebook, *, commitment_cost=0.25, tile_n=512):
    """Eval-mode forward of VectorQuantizer.

    inputs:   (..., D) channels-last
    codebook: (K, D)   == nn.Embedding(num_embeddings, embedding_dim).weight
    Returns (loss, quantized, perplexity, encoding_indices, inputs).
    """
    input_shape = inputs.shape
    K, D = codebook.shape
    assert input_shape[-1] == D
    assert tile_n % 128 == 0, "tile_n must be a multiple of 128"

    flat = inputs.reshape(-1, D)
    N = flat.shape[0]

    # Shrink the tile for tiny inputs: keeps a 128-multiple, avoids one huge
    # mostly-padded tile, and reaches >=2 grid steps sooner (v7x two-TC balance).
    tile_n = max(128, min(tile_n, pl.cdiv(N, 128) * 128))
    num_tiles = pl.cdiv(N, tile_n)
    masked = (N % tile_n) != 0     # edge tile handled in-kernel; no wrapper jnp.pad copy

    # Hoisted once per call; resident in VMEM across the whole grid.
    cb_t = codebook.T                                                        # (D, K)
    cb_sq_half = 0.5 * jnp.sum(jnp.square(codebook.astype(jnp.float32)),
                               axis=1)[None, :]                              # (1, K)

    # VMEM budget: double-buffered streaming tiles + resident codebook copies
    # + (TN,K) f32 temporaries, with headroom; clamped to fit every generation
    # (v5e default scoped limit is only 16 MiB; v7x physical is 64 MiB per TC).
    in_b = jnp.dtype(inputs.dtype).itemsize
    cb_b = jnp.dtype(codebook.dtype).itemsize
    vmem_need = (4 * tile_n * D * in_b              # x in + q out, double-buffered
                 + 4 * K * D * cb_b                 # codebook + codebook^T buffers
                 + 4 * tile_n * K * 4               # xe / dists / one-hot live f32 temps
                 + 8 * (2 * tile_n + K) * 4         # idx / sse / count tile outputs
                 + (1 << 20))
    vmem_limit = int(min(max(2 * vmem_need, 32 * 1024 * 1024), 56 * 1024 * 1024))
    # TODO(synk): for very large K (>=4096) the (tile_n, K) temporaries dominate; add a
    #             second "arbitrary" grid axis tiling K with running min/argmin scratch.

    kernel = functools.partial(_vq_kernel, n_valid=N, masked=masked)

    q_flat, idx_tiles, counts, sse = pl.pallas_call(
        kernel,
        grid=(num_tiles,),
        in_specs=[
            pl.BlockSpec((tile_n, D), lambda i: (i, 0)),   # x tile (streamed over N)
            pl.BlockSpec((K, D), lambda i: (0, 0)),        # codebook    (grid-invariant)
            pl.BlockSpec((D, K), lambda i: (0, 0)),        # codebook^T  (grid-invariant)
            pl.BlockSpec((1, K), lambda i: (0, 0)),        # 0.5*||e||^2 (grid-invariant)
        ],
        out_specs=[
            pl.BlockSpec((tile_n, D), lambda i: (i, 0)),   # quantized rows
            pl.BlockSpec((1, tile_n), lambda i: (i, 0)),   # indices, lane-dense row/tile
            pl.BlockSpec((1, K), lambda i: (i, 0)),        # per-tile code counts
            pl.BlockSpec((1, tile_n), lambda i: (i, 0)),   # per-row squared error
        ],
        out_shape=[
            jax.ShapeDtypeStruct((N, D), inputs.dtype),
            jax.ShapeDtypeStruct((num_tiles, tile_n), jnp.int32),
            jax.ShapeDtypeStruct((num_tiles, K), jnp.float32),
            jax.ShapeDtypeStruct((num_tiles, tile_n), jnp.float32),
        ],
        compiler_params=pltpu.CompilerParams(
            # No grid-resident accumulators -> safe to shard across TensorCores (v7x).
            dimension_semantics=("parallel",),
            vmem_limit_bytes=vmem_limit,
        ),
    )(flat, codebook, cb_t, cb_sq_half)

    quantized = q_flat.reshape(input_shape)

    # e_latent = mse(sg(q), x), c = mse(q, sg(x)); identical forward values.
    mse = jnp.sum(sse) / jnp.float32(N * D)
    loss = mse + commitment_cost * mse

    # Straight-through estimator (forward value == quantized).
    quantized_st = inputs + lax.stop_gradient(quantized - inputs)
    # TODO(synk): gradients do not reproduce the module's detach structure without a custom VJP.

    avg_probs = jnp.sum(counts, axis=0) / jnp.float32(N)
    perplexity = jnp.exp(-jnp.sum(avg_probs * jnp.log(avg_probs + 1e-10)))

    encoding_indices = idx_tiles.reshape(-1)[:N].reshape(input_shape[:-1])

    return loss, quantized_st, perplexity, encoding_indices, inputs


if __name__ == "__main__":
    commitment_cost = 0.25
    key = jax.random.PRNGKey(0)

    def reference_check(x, codebook, out):
        loss, quantized, perplexity, indices, inputs_out = out
        K, D = codebook.shape
        flat = x.reshape(-1, D).astype(jnp.float32)
        N = flat.shape[0]
        cb32 = codebook.astype(jnp.float32)
        d_ref = (jnp.sum(flat ** 2, axis=1, keepdims=True)
                 + jnp.sum(cb32 ** 2, axis=1)
                 - 2.0 * flat @ cb32.T)
        idx_k = indices.reshape(-1)

        # selected codes attain the minimal distance (tie-robust)
        sel_d = jnp.take_along_axis(d_ref, idx_k[:, None], axis=1)[:, 0]
        assert jnp.allclose(sel_d, jnp.min(d_ref, axis=1), atol=1e-3, rtol=1e-5)
        # indices agree with torch.argmin except (at most) exact fp near-ties
        assert jnp.mean(idx_k == jnp.argmin(d_ref, axis=1)) > 0.99
        # quantized == selected codebook rows (exact row selection via one-hot matmul)
        q_sel = codebook[idx_k].reshape(x.shape)
        assert jnp.allclose(quantized, q_sel, atol=1e-5)
        # loss == (1 + commitment_cost) * mse(quantized, x)
        mse_ref = jnp.mean((q_sel.astype(jnp.float32) - x.astype(jnp.float32)) ** 2)
        assert jnp.allclose(loss, (1.0 + commitment_cost) * mse_ref, atol=1e-4, rtol=1e-4)
        # perplexity consistent with the selected encodings
        cnts = jnp.sum(jax.nn.one_hot(idx_k, K), axis=0)
        avg = cnts / N
        ppl_ref = jnp.exp(-jnp.sum(avg * jnp.log(avg + 1e-10)))
        assert jnp.allclose(perplexity, ppl_ref, atol=1e-4, rtol=1e-4)
        # inputs passed through unchanged, index shape matches spatial dims
        assert jnp.array_equal(inputs_out, x)
        assert indices.shape == x.shape[:-1]

    # --- config A: tiny VQ (K=8, D=16), like a toy VQ-VAE; exercises D<128 / K<128 ---
    k1, k2, k3, k4 = jax.random.split(key, 4)
    cb_a = jax.random.normal(k1, (8, 16), dtype=jnp.float32)        # Embedding.weight.normal_()
    cases_a = [
        jax.random.normal(k2, (2, 4, 16, 16), dtype=jnp.float32),   # N=128  -> 1 tile
        jax.random.normal(k3, (4, 16, 16, 16), dtype=jnp.float32),  # N=1024 -> 2 tiles of 512
        jax.random.normal(k4, (3, 5, 7, 16), dtype=jnp.float32),    # N=105  -> masked edge tile
    ]
    for x in cases_a:
        out = jax.block_until_ready(
            vector_quantizer_forward(x, cb_a, commitment_cost=commitment_cost))
        reference_check(x, cb_a, out)

    # --- config B: lane/MXU-aligned VQ (K=128, D=128) ---
    k5, k6 = jax.random.split(k1)
    cb_b = jax.random.normal(k5, (128, 128), dtype=jnp.float32)
    x_b = jax.random.normal(k6, (2, 4, 16, 128), dtype=jnp.float32)  # N=128
    out_b = jax.block_until_ready(
        vector_quantizer_forward(x_b, cb_b, commitment_cost=commitment_cost))
    reference_check(x_b, cb_b, out_b)

    print("KERNEL_OK")
</pallas_src>

<mosaic_0001>
module attributes {stable_mosaic.version = 11 : i64} {
  func.func @_vq_kernel(%arg0: i32, %arg1: memref<128x16xf32, #tpu.memory_space<vmem>>, %arg2: memref<8x16xf32, #tpu.memory_space<vmem>>, %arg3: memref<16x8xf32, #tpu.memory_space<vmem>>, %arg4: memref<1x8xf32, #tpu.memory_space<vmem>>, %arg5: memref<128x16xf32, #tpu.memory_space<vmem>>, %arg6: memref<1x128xi32, #tpu.memory_space<vmem>>, %arg7: memref<1x8xf32, #tpu.memory_space<vmem>>, %arg8: memref<1x128xf32, #tpu.memory_space<vmem>>) attributes {dimension_semantics = [#tpu.dimension_semantics<parallel>], iteration_bounds = array<i64: 1>, scalar_prefetch = 0 : i64, scratch_operands = 0 : i64, tpu.core_type = #tpu.core_type<tc>, window_params = [{transform_indices = @transform_0, window_bounds = array<i64: 128, 16>}, {pipeline_mode = #tpu.pipeline_mode<synchronous>, transform_indices = @transform_1, window_bounds = array<i64: 8, 16>}, {pipeline_mode = #tpu.pipeline_mode<synchronous>, transform_indices = @transform_2, window_bounds = array<i64: 16, 8>}, {pipeline_mode = #tpu.pipeline_mode<synchronous>, transform_indices = @transform_3, window_bounds = array<i64: 1, 8>}, {transform_indices = @transform_4, window_bounds = array<i64: 128, 16>}, {transform_indices = @transform_5, window_bounds = array<i64: 1, 128>}, {transform_indices = @transform_6, window_bounds = array<i64: 1, 8>}, {transform_indices = @transform_7, window_bounds = array<i64: 1, 128>}]} {
    %c0 = arith.constant 0 : index
    %c0_0 = arith.constant 0 : index
    %0 = vector.load %arg1[%c0, %c0_0] : memref<128x16xf32, #tpu.memory_space<vmem>>, vector<128x16xf32>
    %c0_1 = arith.constant 0 : index
    %c0_2 = arith.constant 0 : index
    %1 = vector.load %arg2[%c0_1, %c0_2] : memref<8x16xf32, #tpu.memory_space<vmem>>, vector<8x16xf32>
    %c0_3 = arith.constant 0 : index
    %c0_4 = arith.constant 0 : index
    %2 = vector.load %arg3[%c0_3, %c0_4] : memref<16x8xf32, #tpu.memory_space<vmem>>, vector<16x8xf32>
    %cst = arith.constant dense<0.000000e+00> : vector<128x8xf32>
    %3 = tpu.matmul %0, %2, %cst {dimension_numbers = #tpu.dot_dimension_numbers<[1], [0], [0], [1], [0, 0, 1, 1], [], []>} : vector<128x16xf32>, vector<16x8xf32>, vector<128x8xf32> -> vector<128x8xf32>
    %c0_5 = arith.constant 0 : index
    %c0_6 = arith.constant 0 : index
    %4 = vector.load %arg4[%c0_5, %c0_6] : memref<1x8xf32, #tpu.memory_space<vmem>>, vector<1x8xf32>
    %5 = vector.broadcast %4 : vector<1x8xf32> to vector<128x8xf32>
    %6 = arith.subf %5, %3 : vector<128x8xf32>
    %7 = tpu.iota {dimensions = array<i32: 1>} : vector<128x8xi32>
    %cst_7 = arith.constant dense<0x7F800000> : vector<128xf32>
    %8 = vector.multi_reduction <minimumf>, %6, %cst_7 [1] : vector<128x8xf32> to vector<128xf32>
    %9 = vector.shape_cast %8 : vector<128xf32> to vector<128x1xf32>
    %10 = vector.broadcast %9 : vector<128x1xf32> to vector<128x8xf32>
    %11 = arith.cmpf oeq, %6, %10 : vector<128x8xf32>
    %c8_i32 = arith.constant 8 : i32
    %12 = vector.broadcast %c8_i32 : i32 to vector<128x8xi32>
    %13 = arith.select %11, %7, %12 : vector<128x8xi1>, vector<128x8xi32>
    %cst_8 = arith.constant dense<2147483647> : vector<128xi32>
    %14 = vector.multi_reduction <minsi>, %13, %cst_8 [1] : vector<128x8xi32> to vector<128xi32>
    %15 = vector.shape_cast %14 : vector<128xi32> to vector<128x1xi32>
    %16 = vector.broadcast %15 : vector<128x1xi32> to vector<128x8xi32>
    %17 = arith.cmpi eq, %7, %16 : vector<128x8xi32>
    %18 = arith.extui %17 : vector<128x8xi1> to vector<128x8xi32>
    %19 = arith.sitofp %18 : vector<128x8xi32> to vector<128x8xf32>
    %cst_9 = arith.constant dense<0.000000e+00> : vector<128x16xf32>
    %20 = tpu.matmul %19, %1, %cst_9 {dimension_numbers = #tpu.dot_dimension_numbers<[1], [0], [0], [1], [0, 0, 1, 1], [], []>} : vector<128x8xf32>, vector<8x16xf32>, vector<128x16xf32> -> vector<128x16xf32>
    %c0_10 = arith.constant 0 : index
    %c0_11 = arith.constant 0 : index
    %21 = vector.load %arg5[%c0_10, %c0_11] : memref<128x16xf32, #tpu.memory_space<vmem>>, vector<128x16xf32>
    tpu.vector_store %arg5[%c0_10, %c0_11], %20 {strides = array<i32>} : memref<128x16xf32, #tpu.memory_space<vmem>>, vector<128x16xf32>,
    %cst_12 = arith.constant dense<0.000000e+00> : vector<8xf32>
    %22 = vector.multi_reduction <add>, %19, %cst_12 [0] : vector<128x8xf32> to vector<8xf32>
    %23 = vector.shape_cast %22 : vector<8xf32> to vector<1x8xf32>
    %c0_13 = arith.constant 0 : index
    %c0_14 = arith.constant 0 : index
    %24 = vector.load %arg7[%c0_13, %c0_14] : memref<1x8xf32, #tpu.memory_space<vmem>>, vector<1x8xf32>
    tpu.vector_store %arg7[%c0_13, %c0_14], %23 {strides = array<i32>} : memref<1x8xf32, #tpu.memory_space<vmem>>, vector<1x8xf32>,
    %cst_15 = arith.constant dense<2147483647> : vector<128xi32>
    %25 = vector.multi_reduction <minsi>, %13, %cst_15 [1] : vector<128x8xi32> to vector<128xi32>
    %26 = vector.shape_cast %25 : vector<128xi32> to vector<1x128xi32>
    %c0_16 = arith.constant 0 : index
    %c0_17 = arith.constant 0 : index
    %27 = vector.load %arg6[%c0_16, %c0_17] : memref<1x128xi32, #tpu.memory_space<vmem>>, vector<1x128xi32>
    tpu.vector_store %arg6[%c0_16, %c0_17], %26 {strides = array<i32>} : memref<1x128xi32, #tpu.memory_space<vmem>>, vector<1x128xi32>,
    %28 = arith.mulf %0, %0 : vector<128x16xf32>
    %cst_18 = arith.constant dense<0.000000e+00> : vector<128xf32>
    %29 = vector.multi_reduction <add>, %28, %cst_18 [1] : vector<128x16xf32> to vector<128xf32>
    %cst_19 = arith.constant dense<0x7F800000> : vector<128xf32>
    %30 = vector.multi_reduction <minimumf>, %6, %cst_19 [1] : vector<128x8xf32> to vector<128xf32>
    %cst_20 = arith.constant 2.000000e+00 : f32
    %31 = vector.broadcast %cst_20 : f32 to vector<128xf32>
    %32 = arith.mulf %31, %30 : vector<128xf32>
    %33 = arith.addf %32, %29 : vector<128xf32>
    %34 = vector.shape_cast %33 : vector<128xf32> to vector<1x128xf32>
    %c0_21 = arith.constant 0 : index
    %c0_22 = arith.constant 0 : index
    %35 = vector.load %arg8[%c0_21, %c0_22] : memref<1x128xf32, #tpu.memory_space<vmem>>, vector<1x128xf32>
    tpu.vector_store %arg8[%c0_21, %c0_22], %34 {strides = array<i32>} : memref<1x128xf32, #tpu.memory_space<vmem>>, vector<1x128xf32>,
    return
  }
  func.func @transform_0(%arg0: i32) -> (i32, i32) {
    %c0_i32 = arith.constant 0 : i32
    %c0_i32_0 = arith.constant 0 : i32
    return %arg0, %c0_i32 : i32, i32
  }
  func.func @transform_1(%arg0: i32) -> (i32, i32) {
    %c0_i32 = arith.constant 0 : i32
    %c0_i32_0 = arith.constant 0 : i32
    %c0_i32_1 = arith.constant 0 : i32
    return %c0_i32, %c0_i32_0 : i32, i32
  }
  func.func @transform_2(%arg0: i32) -> (i32, i32) {
    %c0_i32 = arith.constant 0 : i32
    %c0_i32_0 = arith.constant 0 : i32
    %c0_i32_1 = arith.constant 0 : i32
    return %c0_i32, %c0_i32_0 : i32, i32
  }
  func.func @transform_3(%arg0: i32) -> (i32, i32) {
    %c0_i32 = arith.constant 0 : i32
    %c0_i32_0 = arith.constant 0 : i32
    %c0_i32_1 = arith.constant 0 : i32
    return %c0_i32, %c0_i32_0 : i32, i32
  }
  func.func @transform_4(%arg0: i32) -> (i32, i32) {
    %c0_i32 = arith.constant 0 : i32
    %c0_i32_0 = arith.constant 0 : i32
    return %arg0, %c0_i32 : i32, i32
  }
  func.func @transform_5(%arg0: i32) -> (i32, i32) {
    %c0_i32 = arith.constant 0 : i32
    %c0_i32_0 = arith.constant 0 : i32
    return %arg0, %c0_i32 : i32, i32
  }
  func.func @transform_6(%arg0: i32) -> (i32, i32) {
    %c0_i32 = arith.constant 0 : i32
    %c0_i32_0 = arith.constant 0 : i32
    return %arg0, %c0_i32 : i32, i32
  }
  func.func @transform_7(%arg0: i32) -> (i32, i32) {
    %c0_i32 = arith.constant 0 : i32
    %c0_i32_0 = arith.constant 0 : i32
    return %arg0, %c0_i32 : i32, i32
  }
}

</mosaic_0001>

<bundles_post_ra>
// kernel: vector_quantizer_forward.1
= control target key start
LH: loop header
LB: loop body
LE: loop exit
PB: predicated region body
PF: predicated region fallthrough
CT: control target
= control target key end

     0   :  { %13 = vsyncpa [#allocation3], 0  ;;  %s1035_s27 = smov [#allocation2]   ;;  %s1036_s29 = smov 128   ;;  %s1893_s0 = inlined_call_operand.hbm [shape: f32[128,16], index: 0, kind: input, shape index: {}]   ;;  %s1894_s1 = inlined_call_operand.vmem [shape: f32[8,16], index: 1, kind: input, shape index: {}]   ;;  %s1895_s2 = inlined_call_operand.vmem [shape: f32[16,8], index: 2, kind: input, shape index: {}]   ;;  %s1896_s3 = inlined_call_operand.vmem [shape: f32[1,8], index: 3, kind: input, shape index: {}]   ;;  %s1897_s4 = inlined_call_operand.vmem [shape: f32[128,16], index: 4, kind: output, shape index: {0}]   ;;  %s1898_s5 = inlined_call_operand.vmem [shape: s32[1,128], index: 5, kind: output, shape index: {1}]   ;;  %s1899_s6 = inlined_call_operand.vmem [shape: f32[1,8], index: 6, kind: output, shape index: {2}]   ;;  %s1900_s7 = inlined_call_operand.vmem [shape: f32[1,128], index: 7, kind: output, shape index: {3}]  }
   0x1   :  { %s18_s26 = sshll.u32 %s1893_s0, 4  ;;  %s20_s28 = sshll.u32 %s1035_s27, 4  ;;  %s19_s26 = int_to_ptr.hbm [resolvable:$true] %s18_s26  ;;  %s21_s28 = int_to_ptr.vmem [resolvable:$true] %s20_s28 }
   0x2   :  { %s1037_s30 = smov 8  }
   0x3   :  { %26 = dma.hbm_to_vmem [thread:$0]  %s19_s26, 2048, %s21_s28, [#allocation3], %s1036_s29, %s1036_s29, %s1037_s30  }
   0x4   :  { %1033 = dma.done.wait [#allocation3], 2048  }
   0x5   :  { %1034 = vsyncadd [#allocation3], 4294965248  ;;  %v55_v0 = vld [vmem:[%s1895_s2 + $0x8] sm:$0xff]  ;;  %v54_v1 = vld [vmem:[%s1895_s2] sm:$0xff]  ;;  %vm56_vm0 = vcmask 130048   ;;  %vm192_vm1 = vcmask 64512   ;;  %v190_v62 = vlaneseq }
   0x6   :  { %119 = vmatpush.msra.mxu0 %v55_v0  ;;  %1001 = vmatpush.msra.mxu2 %v55_v0  ;;  %v1088_v2 = vld [vmem:[#allocation2] sm:$0xff]  ;;  %v1096_v4 = vld [vmem:[#allocation2 + $0x8] sm:$0xff]  ;;  %v1104_v6 = vld [vmem:[#allocation2 + $0x10] sm:$0xff] }
   0x7   :  { %v1090_v3 = vld [vmem:[#allocation2 + $0x40] sm:$0xff]  ;;  %v1098_v5 = vld [vmem:[#allocation2 + $0x48] sm:$0xff]  ;;  %v1106_v7 = vld [vmem:[#allocation2 + $0x50] sm:$0xff]  ;;  %v1226_v63 = vand.u32 127, %v190_v62 }
   0x8   :  { %120 = vmatpush.msra.mxu0 %v54_v1  ;;  %1002 = vmatpush.msra.mxu2 %v54_v1  ;;  %v1112_v8 = vld [vmem:[#allocation2 + $0x18] sm:$0xff]  ;;  %v1120_v10 = vld [vmem:[#allocation2 + $0x20] sm:$0xff]  ;;  %v1128_v12 = vld [vmem:[#allocation2 + $0x28] sm:$0xff] }
   0x9   :  { %953 = vmatmul.msk.f32.vlgmr.msra.gmra.mxu0 %vm56_vm0, %v1088_v2  ;;  %961 = vmatmul.msk.f32.vlgmr.msra.gmra.mxu2 %vm56_vm0, %v1090_v3  ;;  %v1114_v9 = vld [vmem:[#allocation2 + $0x58] sm:$0xff]  ;;  %v1122_v11 = vld [vmem:[#allocation2 + $0x60] sm:$0xff]  ;;  %v1130_v13 = vld [vmem:[#allocation2 + $0x68] sm:$0xff] }
   0xa   :  { %v1136_v14 = vld [vmem:[#allocation2 + $0x30] sm:$0xff]  ;;  %v1144_v16 = vld [vmem:[#allocation2 + $0x38] sm:$0xff]  ;;  %v1155_v18 = vld [vmem:[%s1896_s3] ss:$0 sm:$0xff] }
   0xb   :  { %v1138_v15 = vld [vmem:[#allocation2 + $0x70] sm:$0xff]  ;;  %v1148_v17 = vld [vmem:[#allocation2 + $0x78] sm:$0xff] }
  0x11   :  { %954 = vmatmul.msk.f32.gmra.mxu0 %vm56_vm0, %v1096_v4  ;;  %962 = vmatmul.msk.f32.gmra.mxu2 %vm56_vm0, %v1098_v5 }
  0x19   :  { %955 = vmatmul.msk.f32.gmra.mxu0 %vm56_vm0, %v1104_v6  ;;  %963 = vmatmul.msk.f32.gmra.mxu2 %vm56_vm0, %v1106_v7 }
  0x21   :  { %956 = vmatmul.msk.f32.gmra.mxu0 %vm56_vm0, %v1112_v8  ;;  %964 = vmatmul.msk.f32.gmra.mxu2 %vm56_vm0, %v1114_v9 }
  0x29   :  { %957 = vmatmul.msk.f32.gmra.mxu0 %vm56_vm0, %v1120_v10  ;;  %965 = vmatmul.msk.f32.gmra.mxu2 %vm56_vm0, %v1122_v11 }
  0x31   :  { %958 = vmatmul.msk.f32.gmra.mxu0 %vm56_vm0, %v1128_v12  ;;  %966 = vmatmul.msk.f32.gmra.mxu2 %vm56_vm0, %v1130_v13 }
  0x39   :  { %959 = vmatmul.msk.f32.gmra.mxu0 %vm56_vm0, %v1136_v14  ;;  %967 = vmatmul.msk.f32.gmra.mxu2 %vm56_vm0, %v1138_v15 }
  0x41   :  { %960 = vmatmul.msk.f32.gmra.mxu0 %vm56_vm0, %v1144_v16  ;;  %968 = vmatmul.msk.f32.gmra.mxu2 %vm56_vm0, %v1148_v17 }
  0x86   :  { %v122_v19 = vpop.f32.mrf.mxu0 }
  0x87   :  { %v174_v20 = vsub.f32 %v1155_v18, %v122_v19 }
  0x89   :  { %v193_v21 = vsel %vm192_vm1, %v174_v20, inf }
  0x8a   :  { %194 = vmin.xlane.f32.xlu0 %v193_v21 }
  0x8c   :  { %v1159_v22 = vpop.f32.mrf.mxu2 }
  0x8e   :  { %v125_v23 = vpop.f32.mrf.mxu0 }
  0x8f   :  { %v1162_v24 = vsub.f32 %v1155_v18, %v125_v23 }
  0x91   :  { %v196_v25 = vsel %vm192_vm1, %v1162_v24, inf }
  0x92   :  { %197 = vmin.xlane.f32.xlu0 %v196_v25 }
  0x94   :  { %v149_v26 = vpop.f32.mrf.mxu2 }
  0x95   :  { %v1167_v27 = vsub.f32 %v1155_v18, %v149_v26 }
  0x96   :  { %v128_v28 = vpop.f32.mrf.mxu0 }
  0x97   :  { %v220_v29 = vsel %vm192_vm1, %v1167_v27, inf  ;;  %v1172_v30 = vsub.f32 %v1155_v18, %v128_v28 }
  0x98   :  { %221 = vmin.xlane.f32.xlu1 %v220_v29 }
  0x99   :  { %v199_v33 = vsel %vm192_vm1, %v1172_v30, inf }
  0x9c   :  { %v152_v31 = vpop.f32.mrf.mxu2 }
  0x9d   :  { %v1175_v32 = vsub.f32 %v1155_v18, %v152_v31 }
  0x9e   :  { %v131_v34 = vpop.f32.mrf.mxu0 }
  0x9f   :  { %v223_v35 = vsel %vm192_vm1, %v1175_v32, inf  ;;  %v1182_v36 = vsub.f32 %v1155_v18, %v131_v34 }
  0xa0   :  { %224 = vmin.xlane.f32.xlu2 %v223_v35  ;;  %200 = vmin.xlane.f32.xlu1 %v199_v33 }
  0xa1   :  { %v202_v39 = vsel %vm192_vm1, %v1182_v36, inf }
  0xa4   :  { %v155_v37 = vpop.f32.mrf.mxu2 }
  0xa5   :  { %v1185_v38 = vsub.f32 %v1155_v18, %v155_v37 }
  0xa6   :  { %v134_v40 = vpop.f32.mrf.mxu0 }
  0xa7   :  { %v1190_v41 = vsub.f32 %v1155_v18, %v134_v40  ;;  %v226_v42 = vsel %vm192_vm1, %v1185_v38, inf }
  0xa8   :  { %227 = vmin.xlane.f32.xlu0 %v226_v42  ;;  %203 = vmin.xlane.f32.xlu2 %v202_v39 }
  0xa9   :  { %v205_v43 = vsel %vm192_vm1, %v1190_v41, inf }
  0xaa   :  { %206 = vmin.xlane.f32.xlu1 %v205_v43 }
  0xac   :  { %v158_v44 = vpop.f32.mrf.mxu2 }
  0xad   :  { %v1197_v45 = vsub.f32 %v1155_v18, %v158_v44 }
  0xae   :  { %v137_v46 = vpop.f32.mrf.mxu0 }
  0xaf   :  { %v1200_v47 = vsub.f32 %v1155_v18, %v137_v46  ;;  %v229_v48 = vsel %vm192_vm1, %v1197_v45, inf  ;;  %v1280_v46 = vsub.f32 %v1155_v18, %v1159_v22 }
  0xb0   :  { %230 = vmin.xlane.f32.xlu2 %v229_v48 }
  0xb1   :  { %v208_v49 = vsel %vm192_vm1, %v1200_v47, inf }
  0xb2   :  { %209 = vmin.xlane.f32.xlu0 %v208_v49 }
  0xb4   :  { %v161_v50 = vpop.f32.mrf.mxu2 }
  0xb5   :  { %v1207_v51 = vsub.f32 %v1155_v18, %v161_v50 }
  0xb6   :  { %v140_v52 = vpop.f32.mrf.mxu0 }
  0xb7   :  { %v1210_v53 = vsub.f32 %v1155_v18, %v140_v52  ;;  %v232_v54 = vsel %vm192_vm1, %v1207_v51, inf  ;;  %v217_v52 = vsel %vm192_vm1, %v1280_v46, inf }
  0xb8   :  { %233 = vmin.xlane.f32.xlu1 %v232_v54 }
  0xb9   :  { %v211_v55 = vsel %vm192_vm1, %v1210_v53, inf }
  0xba   :  { %212 = vmin.xlane.f32.xlu0 %v211_v55 }
  0xbc   :  { %v164_v56 = vpop.f32.mrf.mxu2 }
  0xbd   :  { %v1217_v57 = vsub.f32 %v1155_v18, %v164_v56 }
  0xbe   :  { %v143_v58 = vpop.f32.mrf.mxu0 }
  0xbf   :  { %v1220_v59 = vsub.f32 %v1155_v18, %v143_v58  ;;  %v235_v60 = vsel %vm192_vm1, %v1217_v57, inf }
  0xc0   :  { %236 = vmin.xlane.f32.xlu1 %v235_v60 }
  0xc1   :  { %v214_v61 = vsel %vm192_vm1, %v1220_v59, inf }
  0xc2   :  { %215 = vmin.xlane.f32.xlu0 %v214_v61 }
  0xc4   :  { %v167_v33 = vpop.f32.mrf.mxu2 }
  0xfd   :  { %v1228_v0 = vpop.xlane.xlu0 %194 }
  0xfe   :  { %vm241_vm2 = vcmp.eq.f32.partialorder %v174_v20, %v1228_v0 }
  0xff   :  { %v257_v1 = vsel %vm241_vm2, %v1226_v63, 8 }
 0x100   :  { %v1233_v19 = vsel %vm192_vm1, %v257_v1, 2147483647 }
 0x101   :  { %v275_v21 = vshra.s32 %v1233_v19, 16 }
 0x103   :  { %v1236_v23 = vcvt.s32.f32 %v275_v21 }
 0x105   :  { %v1238_v25 = vpop.xlane.xlu0 %197  ;;  %278 = vmin.xlane.f32.xlu2 %v1236_v23 }
 0x106   :  { %vm242_vm3 = vcmp.eq.f32.partialorder %v1162_v24, %v1238_v25  ;;  %v1257_v24 = vsub.f32 %v1155_v18, %v167_v33 }
 0x107   :  { %v258_v26 = vsel %vm242_vm3, %v1226_v63, 8 }
 0x108   :  { %v1245_v20 = vsel %vm192_vm1, %v258_v26, 2147483647  ;;  %v238_v40 = vsel %vm192_vm1, %v1257_v24, inf }
 0x109   :  { %v290_v28 = vshra.s32 %v1245_v20, 16 }
 0x10b   :  { %v1248_v29 = vpop.xlane.xlu1 %221  ;;  %v1250_v31 = vcvt.s32.f32 %v290_v28 }
 0x10c   :  { %vm250_vm4 = vcmp.eq.f32.partialorder %v1167_v27, %v1248_v29 }
 0x10d   :  { %v266_v34 = vsel %vm250_vm4, %v1226_v63, 8  ;;  %293 = vmin.xlane.f32.xlu2 %v1250_v31 }
 0x10e   :  { %v1260_v35 = vsel %vm192_vm1, %v266_v34, 2147483647 }
 0x10f   :  { %v410_v37 = vshra.s32 %v1260_v35, 16 }
 0x111   :  { %v1263_v39 = vcvt.s32.f32 %v410_v37 }
 0x113   :  { %v1267_v42 = vpop.xlane.xlu2 %224  ;;  %v1269_v27 = vpop.xlane.xlu1 %200  ;;  %413 = vmin.xlane.f32.xlu1 %v1263_v39 }
 0x114   :  { %vm251_vm5 = vcmp.eq.f32.partialorder %v1175_v32, %v1267_v42  ;;  %vm243_vm6 = vcmp.eq.f32.partialorder %v1172_v30, %v1269_v27 }
 0x115   :  { %v267_v43 = vsel %vm251_vm5, %v1226_v63, 8  ;;  %v259_v44 = vsel %vm243_vm6, %v1226_v63, 8  ;;  %239 = vmin.xlane.f32.xlu2 %v238_v40 }
 0x116   :  { %v1283_v48 = vsel %vm192_vm1, %v259_v44, 2147483647  ;;  %v1286_v49 = vsel %vm192_vm1, %v267_v43, 2147483647 }
 0x117   :  { %v305_v32 = vshra.s32 %v1283_v48, 16  ;;  %v425_v50 = vshra.s32 %v1286_v49, 16 }
 0x119   :  { %v1290_v30 = vcvt.s32.f32 %v305_v32  ;;  %v1299_v18 = vcvt.s32.f32 %v425_v50 }
 0x11b   :  { %v1294_v54 = vpop.xlane.xlu0 %227  ;;  %v1296_v55 = vpop.xlane.xlu2 %203  ;;  %218 = vmin.xlane.f32.xlu1 %v217_v52  ;;  %308 = vmin.xlane.f32.xlu0 %v1290_v30 }
 0x11c   :  { %1907 = vst [vmem:[#allocation5_spill] sm:$0xff] %v1294_v54  ;;  %vm252_vm7 = vcmp.eq.f32.partialorder %v1185_v38, %v1294_v54  ;;  %vm244_vm8 = vcmp.eq.f32.partialorder %v1182_v36, %v1296_v55 }
 0x11d   :  { %v268_v22 = vsel %vm252_vm7, %v1226_v63, 8  ;;  %v260_v56 = vsel %vm244_vm8, %v1226_v63, 8  ;;  %428 = vmin.xlane.f32.xlu2 %v1299_v18  ;;  %v1308_v58 = vpop.xlane.xlu1 %206 }
 0x11e   :  { %vm245_vm9 = vcmp.eq.f32.partialorder %v1190_v41, %v1308_v58  ;;  %v1313_v60 = vsel %vm192_vm1, %v268_v22, 2147483647  ;;  %v1316_v61 = vsel %vm192_vm1, %v260_v56, 2147483647 }
 0x11f   :  { %v261_v38 = vsel %vm245_vm9, %v1226_v63, 8  ;;  %v440_v36 = vshra.s32 %v1313_v60, 16  ;;  %v320_v62 = vshra.s32 %v1316_v61, 16 }
 0x120   :  { %v1322_v1 = vsel %vm192_vm1, %v261_v38, 2147483647 }
 0x121   :  { %v1324_v21 = vcvt.s32.f32 %v440_v36  ;;  %v1326_v26 = vcvt.s32.f32 %v320_v62  ;;  %v335_v41 = vshra.s32 %v1322_v1, 16 }
 0x123   :  { %v1329_v28 = vpop.xlane.xlu2 %230  ;;  %443 = vmin.xlane.f32.xlu1 %v1324_v21  ;;  %323 = vmin.xlane.f32.xlu0 %v1326_v26  ;;  %v1333_v33 = vcvt.s32.f32 %v335_v41 }
 0x124   :  { %1908 = vst [vmem:[#allocation6_spill] sm:$0xff] %v1329_v28  ;;  %vm253_vm10 = vcmp.eq.f32.partialorder %v1197_v45, %v1329_v28  ;;  %v409_v28 = vand.u32 65535, %v1260_v35 }
 0x125   :  { %v269_v34 = vsel %vm253_vm10, %v1226_v63, 8  ;;  %338 = vmin.xlane.f32.xlu2 %v1333_v33  ;;  %v1339_v37 = vpop.xlane.xlu0 %209 }
 0x126   :  { %vm246_vm11 = vcmp.eq.f32.partialorder %v1200_v47, %v1339_v37  ;;  %v1344_v40 = vsel %vm192_vm1, %v269_v34, 2147483647 }
 0x127   :  { %v262_v43 = vsel %vm246_vm11, %v1226_v63, 8  ;;  %v455_v44 = vshra.s32 %v1344_v40, 16 }
 0x128   :  { %v1349_v32 = vsel %vm192_vm1, %v262_v43, 2147483647 }
 0x129   :  { %v1351_v45 = vcvt.s32.f32 %v455_v44  ;;  %v350_v50 = vshra.s32 %v1349_v32, 16 }
 0x12b   :  { %v1354_v52 = vpop.xlane.xlu1 %233  ;;  %458 = vmin.xlane.f32.xlu0 %v1351_v45  ;;  %v1357_v22 = vcvt.s32.f32 %v350_v50 }
 0x12c   :  { %1909 = vst [vmem:[#allocation7_spill] sm:$0xff] %v1354_v52  ;;  %vm254_vm12 = vcmp.eq.f32.partialorder %v1207_v51, %v1354_v52 }
 0x12d   :  { %v270_v47 = vsel %vm254_vm12, %v1226_v63, 8  ;;  %353 = vmin.xlane.f32.xlu1 %v1357_v22  ;;  %v1363_v56 = vpop.xlane.xlu0 %212 }
 0x12e   :  { %vm247_vm13 = vcmp.eq.f32.partialorder %v1210_v53, %v1363_v56  ;;  %v1368_v38 = vsel %vm192_vm1, %v270_v47, 2147483647 }
 0x12f   :  { %v263_v36 = vsel %vm247_vm13, %v1226_v63, 8  ;;  %v470_v62 = vshra.s32 %v1368_v38, 16 }
 0x130   :  { %v1373_v41 = vsel %vm192_vm1, %v263_v36, 2147483647 }
 0x131   :  { %v1375_v51 = vcvt.s32.f32 %v470_v62  ;;  %v365_v34 = vshra.s32 %v1373_v41, 16  ;;  %v274_v62 = vand.u32 65535, %v1233_v19 }
 0x133   :  { %v1378_v43 = vpop.xlane.xlu1 %236  ;;  %473 = vmin.xlane.f32.xlu0 %v1375_v51  ;;  %v1381_v44 = vcvt.s32.f32 %v365_v34  ;;  %v276_v52 = vcvt.s32.f32 %v274_v62 }
 0x134   :  { %1910 = vst [vmem:[#allocation8_spill] sm:$0xff] %v1378_v43  ;;  %vm255_vm14 = vcmp.eq.f32.partialorder %v1217_v57, %v1378_v43 }
 0x135   :  { %v271_v53 = vsel %vm255_vm14, %v1226_v63, 8  ;;  %368 = vmin.xlane.f32.xlu1 %v1381_v44  ;;  %v1397_v54 = vpop.xlane.xlu0 %215 }
 0x136   :  { %v1388_v50 = vsel %vm192_vm1, %v271_v53, 2147483647  ;;  %vm248_vm2 = vcmp.eq.f32.partialorder %v1220_v59, %v1397_v54  ;;  %v289_v53 = vand.u32 65535, %v1245_v20  ;;  %v411_v20 = vcvt.s32.f32 %v409_v28 }
 0x137   :  { %v485_v47 = vshra.s32 %v1388_v50, 16 }
 0x138   :  { %v291_v19 = vcvt.s32.f32 %v289_v53 }
 0x139   :  { %v1391_v36 = vcvt.s32.f32 %v485_v47  ;;  %v264_v47 = vsel %vm248_vm2, %v1226_v63, 8 }
 0x13b   :  { %488 = vmin.xlane.f32.xlu0 %v1391_v36 }
 0x178   :  { %v1395_v34 = vpop.xlane.xlu2 %278 }
 0x179   :  { %vm280_vm15 = vcmp.eq.f32.partialorder %v1236_v23, %v1395_v34  ;;  %v1411_v23 = vsel %vm192_vm1, %v264_v47, 2147483647  ;;  %v304_v47 = vand.u32 65535, %v1283_v48 }
 0x17a   :  { %v281_v57 = vsel %vm280_vm15, %v276_v52, inf  ;;  %v380_v52 = vshra.s32 %v1411_v23, 16 }
 0x17b   :  { %282 = vmin.xlane.f32.xlu2 %v281_v57 }
 0x180   :  { %v1405_v43 = vpop.xlane.xlu2 %293 }
 0x181   :  { %vm295_vm3 = vcmp.eq.f32.partialorder %v1250_v31, %v1405_v43  ;;  %v1422_v31 = vcvt.s32.f32 %v380_v52  ;;  %v306_v52 = vcvt.s32.f32 %v304_v47 }
 0x182   :  { %v296_v62 = vsel %vm295_vm3, %v291_v19, inf  ;;  %v424_v19 = vand.u32 65535, %v1286_v49 }
 0x183   :  { %297 = vmin.xlane.f32.xlu2 %v296_v62 }
 0x186   :  { %v1414_v59 = vpop.xlane.xlu1 %413 }
 0x187   :  { %vm415_vm4 = vcmp.eq.f32.partialorder %v1263_v39, %v1414_v59 }
 0x188   :  { %v1418_v57 = vpop.xlane.xlu2 %239  ;;  %v416_v53 = vsel %vm415_vm4, %v411_v20, inf  ;;  %vm732_vm4 = vcmask 130112  }
 0x189   :  { %1911 = vst [vmem:[#allocation9_spill] sm:$0xff] %v1418_v57  ;;  %vm256_vm5 = vcmp.eq.f32.partialorder %v1257_v24, %v1418_v57  ;;  %417 = vmin.xlane.f32.xlu1 %v416_v53  ;;  %v426_v57 = vcvt.s32.f32 %v424_v19 }
 0x18a   :  { %v272_v35 = vsel %vm256_vm5, %v1226_v63, 8 }
 0x18b   :  { %383 = vmin.xlane.f32.xlu2 %v1422_v31  ;;  %v1428_v28 = vsel %vm192_vm1, %v272_v35, 2147483647 }
 0x18c   :  { %v500_v39 = vshra.s32 %v1428_v28, 16 }
 0x18e   :  { %v1432_v62 = vpop.xlane.xlu1 %218  ;;  %v1434_v20 = vpop.xlane.xlu0 %308  ;;  %v1436_v24 = vcvt.s32.f32 %v500_v39  ;;  %v439_v39 = vand.u32 65535, %v1313_v60 }
 0x18f   :  { %1912 = vst [vmem:[#allocation10_spill] sm:$0xff] %v1432_v62  ;;  %vm249_vm6 = vcmp.eq.f32.partialorder %v1280_v46, %v1432_v62  ;;  %vm310_vm7 = vcmp.eq.f32.partialorder %v1290_v30, %v1434_v20  ;;  %v319_v46 = vand.u32 65535, %v1316_v61 }
 0x190   :  { %v265_v48 = vsel %vm249_vm6, %v1226_v63, 8  ;;  %v1443_v53 = vpop.xlane.xlu2 %428  ;;  %v311_v35 = vsel %vm310_vm7, %v306_v52, inf  ;;  %v441_v61 = vcvt.s32.f32 %v439_v39 }
 0x191   :  { %503 = vmin.xlane.f32.xlu1 %v1436_v24  ;;  %312 = vmin.xlane.f32.xlu0 %v311_v35  ;;  %vm430_vm8 = vcmp.eq.f32.partialorder %v1299_v18, %v1443_v53  ;;  %v1449_v49 = vsel %vm192_vm1, %v265_v48, 2147483647  ;;  %v321_v52 = vcvt.s32.f32 %v319_v46  ;;  %v334_v48 = vand.u32 65535, %v1322_v1 }
 0x192   :  { %v431_v47 = vsel %vm430_vm8, %v426_v57, inf  ;;  %v395_v30 = vshra.s32 %v1449_v49, 16  ;;  %v349_v46 = vand.u32 65535, %v1349_v32  ;;  %v364_v32 = vand.u32 65535, %v1373_v41 }
 0x193   :  { %432 = vmin.xlane.f32.xlu2 %v431_v47  ;;  %v454_v47 = vand.u32 65535, %v1344_v40 }
 0x194   :  { %v1458_v35 = vcvt.s32.f32 %v395_v30  ;;  %v351_v1 = vcvt.s32.f32 %v349_v46 }
 0x195   :  { %v456_v30 = vcvt.s32.f32 %v454_v47  ;;  %v366_v47 = vcvt.s32.f32 %v364_v32 }
 0x196   :  { %v1454_v62 = vpop.xlane.xlu1 %443  ;;  %v1456_v19 = vpop.xlane.xlu0 %323 }
 0x197   :  { %vm325_vm9 = vcmp.eq.f32.partialorder %v1326_v26, %v1456_v19  ;;  %vm445_vm10 = vcmp.eq.f32.partialorder %v1324_v21, %v1454_v62  ;;  %v336_v21 = vcvt.s32.f32 %v334_v48 }
 0x198   :  { %v326_v18 = vsel %vm325_vm9, %v321_v52, inf  ;;  %v1465_v57 = vpop.xlane.xlu2 %338  ;;  %v446_v60 = vsel %vm445_vm10, %v441_v61, inf  ;;  %vm736_vm9 = vcmask 195712  }
 0x199   :  { %398 = vmin.xlane.f32.xlu0 %v1458_v35  ;;  %327 = vmin.xlane.f32.xlu1 %v326_v18  ;;  %vm340_vm11 = vcmp.eq.f32.partialorder %v1333_v33, %v1465_v57  ;;  %v469_v33 = vand.u32 65535, %v1368_v38  ;;  %v484_v38 = vand.u32 65535, %v1388_v50 }
 0x19a   :  { %v341_v52 = vsel %vm340_vm11, %v336_v21, inf }
 0x19b   :  { %447 = vmin.xlane.f32.xlu2 %v446_v60  ;;  %v471_v60 = vcvt.s32.f32 %v469_v33  ;;  %v486_v41 = vcvt.s32.f32 %v484_v38 }
 0x19e   :  { %v1472_v26 = vpop.xlane.xlu0 %458 }
 0x19f   :  { %vm460_vm12 = vcmp.eq.f32.partialorder %v1351_v45, %v1472_v26 }
 0x1a0   :  { %v1476_v39 = vpop.xlane.xlu1 %353  ;;  %v461_v18 = vsel %vm460_vm12, %v456_v30, inf }
 0x1a1   :  { %342 = vmin.xlane.f32.xlu0 %v341_v52  ;;  %462 = vmin.xlane.f32.xlu1 %v461_v18  ;;  %vm355_vm13 = vcmp.eq.f32.partialorder %v1357_v22, %v1476_v39 }
 0x1a2   :  { %v356_v40 = vsel %vm355_vm13, %v351_v1, inf  ;;  %v300_v1 = vcvt.f32.s32 %v1405_v43  ;;  %vm740_vm13 = vcmask 261312  }
 0x1a3   :  { %357 = vmin.xlane.f32.xlu2 %v356_v40  ;;  %v1038_v40 = vmov 0.0  }
 0x1a4   :  { %v301_v32 = vshll.u32 %v300_v1, 16 }
 0x1a6   :  { %v1482_v61 = vpop.xlane.xlu0 %473 }
 0x1a7   :  { %vm475_vm14 = vcmp.eq.f32.partialorder %v1375_v51, %v1482_v61  ;;  %v53_v51 = vld [vmem:[%s1894_s1] sm:$0xff] }
 0x1a8   :  { %v1486_v45 = vpop.xlane.xlu1 %368  ;;  %v476_v48 = vsel %vm475_vm14, %v471_v60, inf  ;;  %624 = vmatpush.msra.mxu1 %v53_v51  ;;  %1003 = vmatpush.msra.mxu3 %v53_v51  ;;  %v1504_v60 = vadd.s32 4294967288, %v1226_v63 }
 0x1a9   :  { %477 = vmin.xlane.f32.xlu0 %v476_v48  ;;  %vm370_vm15 = vcmp.eq.f32.partialorder %v1381_v44, %v1486_v45  ;;  %v285_v44 = vcvt.f32.s32 %v1395_v34  ;;  %v420_v34 = vcvt.f32.s32 %v1414_v59 }
 0x1aa   :  { %v371_v22 = vsel %vm370_vm15, %v366_v47, inf }
 0x1ab   :  { %372 = vmin.xlane.f32.xlu1 %v371_v22  ;;  %v286_v52 = vshll.u32 %v285_v44, 16  ;;  %v379_v22 = vand.u32 65535, %v1411_v23 }
 0x1ae   :  { %v1491_v46 = vpop.xlane.xlu0 %488 }
 0x1af   :  { %vm490_vm2 = vcmp.eq.f32.partialorder %v1391_v36, %v1491_v46 }
 0x1b0   :  { %v491_v21 = vsel %vm490_vm2, %v486_v41, inf  ;;  %v421_v41 = vshll.u32 %v420_v34, 16  ;;  %v791_v34 = vmul.f32 %v1088_v2, %v1088_v2  ;;  %vm744_vm2 = vcmask 326912  }
 0x1b1   :  { %492 = vmin.xlane.f32.xlu2 %v491_v21 }
 0x1b2   :  { %v807_v2 = vsel %vm56_vm0, %v791_v34, 0.0  ;;  %v450_v34 = vcvt.f32.s32 %v1454_v62 }
 0x1ee   :  { %v283_v30 = vpop.xlane.xlu2 %282 }
 0x1ef   :  { %v284_v50 = vcvt.f32.s32 %v283_v30 }
 0x1f1   :  { %v287_v18 = vadd.s32 %v286_v52, %v284_v50 }
 0x1f3   :  { %vm513_vm3 = vcmp.eq.s32.totalorder %v1226_v63, %v287_v18  ;;  %v729_v43 = vperm.slane %v287_v18, %v1226_v63  ;;  %v381_v18 = vcvt.s32.f32 %v379_v22 }
 0x1f4   :  { %v969_v36 = vsel %vm513_vm3, 1.0, %v1038_v40 }
 0x1f5   :  { %985 = vmatmul.msk.f32.vlgmr.msra.gmra.mxu1 %vm192_vm1, %v969_v36  ;;  %v690_v44 = vsel %vm192_vm1, %v969_v36, 0.0  ;;  %v315_v36 = vcvt.f32.s32 %v1434_v20 }
 0x1f6   :  { %v298_v33 = vpop.xlane.xlu2 %297 }
 0x1f7   :  { %v299_v48 = vcvt.f32.s32 %v298_v33  ;;  %v316_v20 = vshll.u32 %v315_v36, 16  ;;  %v794_v36 = vmul.f32 %v1112_v8, %v1112_v8 }
 0x1f9   :  { %v302_v47 = vadd.s32 %v301_v32, %v299_v48  ;;  %v499_v32 = vand.u32 65535, %v1428_v28 }
 0x1fb   :  { %v731_v38 = vperm.slane %v302_v47, %v1504_v60  ;;  %vm514_vm5 = vcmp.eq.s32.totalorder %v1226_v63, %v302_v47  ;;  %v435_v47 = vcvt.f32.s32 %v1443_v53  ;;  %v501_v22 = vcvt.s32.f32 %v499_v32 }
 0x1fc   :  { %v418_v21 = vpop.xlane.xlu1 %417  ;;  %v970_v51 = vsel %vm514_vm5, 1.0, %v1038_v40  ;;  %vm748_vm5 = vcmask 392512  }
 0x1fd   :  { %v733_v30 = vsel %vm732_vm4, %v731_v38, %v729_v43  ;;  %v419_v52 = vcvt.f32.s32 %v418_v21  ;;  %986 = vmatmul.msk.f32.gmra.mxu1 %vm192_vm1, %v970_v51  ;;  %v691_v59 = vsel %vm192_vm1, %v970_v51, 0.0  ;;  %v1537_v43 = vadd.s32 4294967280, %v1226_v63 }
 0x1fe   :  { %v692_v23 = vadd.f32 %v691_v59, %v690_v44  ;;  %v1516_v50 = vpop.xlane.xlu2 %383  ;;  %v436_v53 = vshll.u32 %v435_v47, 16  ;;  %v394_v59 = vand.u32 65535, %v1449_v49 }
 0x1ff   :  { %v1518_v1 = vadd.s32 %v421_v41, %v419_v52  ;;  %vm385_vm6 = vcmp.eq.f32.partialorder %v1422_v31, %v1516_v50  ;;  %v792_v52 = vmul.f32 %v1096_v4, %v1096_v4 }
 0x200   :  { %v386_v33 = vsel %vm385_vm6, %v381_v18, inf  ;;  %v330_v18 = vcvt.f32.s32 %v1456_v19 }
 0x201   :  { %387 = vmin.xlane.f32.xlu0 %v386_v33  ;;  %vm522_vm7 = vcmp.eq.s32.totalorder %v1226_v63, %v1518_v1  ;;  %v810_v8 = vsel %vm56_vm0, %v792_v52, 0.0  ;;  %v795_v52 = vmul.f32 %v1120_v10, %v1120_v10 }
 0x202   :  { %v1527_v48 = vsel %vm522_vm7, 1.0, %v1038_v40  ;;  %v331_v62 = vshll.u32 %v330_v18, 16 }
 0x203   :  { %994 = vmatmul.msk.f32.vlgmr.msra.gmra.mxu3 %vm192_vm1, %v1527_v48 }
 0x204   :  { %v1534_v31 = vpop.xlane.xlu1 %503  ;;  %v313_v28 = vpop.xlane.xlu0 %312 }
 0x205   :  { %v314_v38 = vcvt.f32.s32 %v313_v28  ;;  %vm505_vm8 = vcmp.eq.f32.partialorder %v1436_v24, %v1534_v31 }
 0x206   :  { %v433_v41 = vpop.xlane.xlu2 %432  ;;  %v506_v21 = vsel %vm505_vm8, %v501_v22, inf }
 0x207   :  { %v317_v51 = vadd.s32 %v316_v20, %v314_v38  ;;  %v434_v44 = vcvt.f32.s32 %v433_v41  ;;  %507 = vmin.xlane.f32.xlu1 %v506_v21  ;;  %v396_v20 = vcvt.s32.f32 %v394_v59  ;;  %v816_v21 = vsel %vm56_vm0, %v794_v36, 0.0 }
 0x208   :  { %v793_v59 = vmul.f32 %v1104_v6, %v1104_v6  ;;  %v797_v36 = vmul.f32 %v1136_v14, %v1136_v14 }
 0x209   :  { %v735_v33 = vperm.slane %v317_v51, %v1537_v43  ;;  %v1547_v32 = vadd.s32 %v436_v53, %v434_v44  ;;  %808 = vadd.xlane.f32.xlu0 %v807_v2  ;;  %vm515_vm10 = vcmp.eq.s32.totalorder %v1226_v63, %v317_v51  ;;  %v451_v2 = vshll.u32 %v450_v34, 16 }
 0x20a   :  { %v971_v24 = vsel %vm515_vm10, 1.0, %v1038_v40  ;;  %v345_v53 = vcvt.f32.s32 %v1465_v57  ;;  %v360_v57 = vcvt.f32.s32 %v1476_v39  ;;  %v813_v14 = vsel %vm56_vm0, %v793_v59, 0.0 }
 0x20b   :  { %v737_v4 = vsel %vm736_vm9, %v735_v33, %v733_v30  ;;  %987 = vmatmul.msk.f32.gmra.mxu1 %vm192_vm1, %v971_v24  ;;  %v693_v49 = vsel %vm192_vm1, %v971_v24, 0.0  ;;  %vm523_vm11 = vcmp.eq.s32.totalorder %v1226_v63, %v1547_v32  ;;  %v1566_v30 = vadd.s32 4294967272, %v1226_v63 }
 0x20c   :  { %v694_v19 = vadd.f32 %v693_v49, %v692_v23  ;;  %v328_v47 = vpop.xlane.xlu1 %327  ;;  %v1559_v28 = vpop.xlane.xlu0 %398  ;;  %v1562_v22 = vsel %vm523_vm11, 1.0, %v1038_v40  ;;  %v346_v10 = vshll.u32 %v345_v53, 16  ;;  %v796_v59 = vmul.f32 %v1128_v12, %v1128_v12 }
 0x20d   :  { %v329_v38 = vcvt.f32.s32 %v328_v47  ;;  %995 = vmatmul.msk.f32.gmra.mxu3 %vm192_vm1, %v1562_v22  ;;  %vm400_vm12 = vcmp.eq.f32.partialorder %v1458_v35, %v1559_v28  ;;  %v465_v35 = vcvt.f32.s32 %v1472_v26  ;;  %vm752_vm10 = vcmask 458112  }
 0x20e   :  { %v448_v23 = vpop.xlane.xlu2 %447  ;;  %v401_v41 = vsel %vm400_vm12, %v396_v20, inf }
 0x20f   :  { %v332_v51 = vadd.s32 %v331_v62, %v329_v38  ;;  %v449_v44 = vcvt.f32.s32 %v448_v23  ;;  %811 = vadd.xlane.f32.xlu1 %v810_v8  ;;  %402 = vmin.xlane.f32.xlu2 %v401_v41  ;;  %v819_v8 = vsel %vm56_vm0, %v795_v52, 0.0  ;;  %v466_v20 = vshll.u32 %v465_v35, 16 }
 0x210   :  { %v361_v23 = vshll.u32 %v360_v57, 16  ;;  %v480_v52 = vcvt.f32.s32 %v1482_v61  ;;  %v375_v35 = vcvt.f32.s32 %v1486_v45 }
 0x211   :  { %v739_v18 = vperm.slane %v332_v51, %v1566_v30  ;;  %v1580_v33 = vadd.s32 %v451_v2, %v449_v44  ;;  %817 = vadd.xlane.f32.xlu0 %v816_v21  ;;  %vm516_vm14 = vcmp.eq.s32.totalorder %v1226_v63, %v332_v51  ;;  %v825_v21 = vsel %vm56_vm0, %v797_v36, 0.0 }
 0x212   :  { %v972_v24 = vsel %vm516_vm14, 1.0, %v1038_v40  ;;  %v798_v44 = vmul.f32 %v1144_v16, %v1144_v16  ;;  %v800_v16 = vmul.f32 %v1098_v5, %v1098_v5  ;;  %v481_v5 = vshll.u32 %v480_v52, 16 }
 0x213   :  { %v741_v34 = vsel %vm740_vm13, %v739_v18, %v737_v4  ;;  %988 = vmatmul.msk.f32.gmra.mxu1 %vm192_vm1, %v972_v24  ;;  %v695_v6 = vsel %vm192_vm1, %v972_v24, 0.0  ;;  %vm524_vm15 = vcmp.eq.s32.totalorder %v1226_v63, %v1580_v33  ;;  %v1598_v4 = vadd.s32 4294967264, %v1226_v63 }
 0x214   :  { %v696_v26 = vadd.f32 %v695_v6, %v694_v19  ;;  %v463_v49 = vpop.xlane.xlu1 %462  ;;  %v343_v47 = vpop.xlane.xlu0 %342  ;;  %v1593_v39 = vsel %vm524_vm15, 1.0, %v1038_v40  ;;  %v1603_v19 = vadd.s32 4294967256, %v1226_v63  ;;  %v828_v36 = vsel %vm56_vm0, %v798_v44, 0.0 }
 0x215   :  { %v464_v62 = vcvt.f32.s32 %v463_v49  ;;  %v344_v38 = vcvt.f32.s32 %v343_v47  ;;  %996 = vmatmul.msk.f32.gmra.mxu3 %vm192_vm1, %v1593_v39  ;;  %v822_v47 = vsel %vm56_vm0, %v796_v59, 0.0  ;;  %v799_v44 = vmul.f32 %v1090_v3, %v1090_v3 }
 0x216   :  { %v358_v41 = vpop.xlane.xlu2 %357  ;;  %v495_v52 = vcvt.f32.s32 %v1491_v46  ;;  %vm756_vm14 = vcmask 523712  }
 0x217   :  { %v1606_v2 = vadd.s32 %v466_v20, %v464_v62  ;;  %v347_v53 = vadd.s32 %v346_v10, %v344_v38  ;;  %v359_v51 = vcvt.f32.s32 %v358_v41  ;;  %820 = vadd.xlane.f32.xlu1 %v819_v8  ;;  %814 = vadd.xlane.f32.xlu2 %v813_v14  ;;  %v376_v20 = vshll.u32 %v375_v35, 16 }
 0x218   :  { %v1640_v41 = vadd.s32 4294967248, %v1226_v63  ;;  %v803_v35 = vmul.f32 %v1122_v11, %v1122_v11 }
 0x219   :  { %v743_v18 = vperm.slane %v347_v53, %v1598_v4  ;;  %v362_v57 = vadd.s32 %v361_v23, %v359_v51  ;;  %826 = vadd.xlane.f32.xlu0 %v825_v21  ;;  %vm517_vm3 = vcmp.eq.s32.totalorder %v1226_v63, %v347_v53  ;;  %vm525_vm6 = vcmp.eq.s32.totalorder %v1226_v63, %v1606_v2 }
 0x21a   :  { %v973_v24 = vsel %vm517_vm3, 1.0, %v1038_v40  ;;  %v1627_v49 = vsel %vm525_vm6, 1.0, %v1038_v40  ;;  %v801_v51 = vmul.f32 %v1106_v7, %v1106_v7  ;;  %vm760_vm6 = vcmask 589312  }
 0x21b   :  { %v745_v61 = vsel %vm744_vm2, %v743_v18, %v741_v34  ;;  %v747_v12 = vperm.slane %v362_v57, %v1603_v19  ;;  %989 = vmatmul.msk.f32.gmra.mxu1 %vm192_vm1, %v973_v24  ;;  %v697_v45 = vsel %vm192_vm1, %v973_v24, 0.0  ;;  %vm518_vm7 = vcmp.eq.s32.totalorder %v1226_v63, %v362_v57 }
 0x21c   :  { %v698_v10 = vadd.f32 %v697_v45, %v696_v26  ;;  %v478_v6 = vpop.xlane.xlu0 %477  ;;  %v974_v14 = vsel %vm518_vm7, 1.0, %v1038_v40  ;;  %v834_v26 = vsel %vm56_vm0, %v800_v16, 0.0  ;;  %v837_v46 = vsel %vm56_vm0, %v801_v51, 0.0 }
 0x21d   :  { %v749_v34 = vsel %vm748_vm5, %v747_v12, %v745_v61  ;;  %v479_v8 = vcvt.f32.s32 %v478_v6  ;;  %997 = vmatmul.msk.f32.gmra.mxu3 %vm192_vm1, %v1627_v49  ;;  %v699_v38 = vsel %vm192_vm1, %v974_v14, 0.0  ;;  %v831_v57 = vsel %vm56_vm0, %v799_v44, 0.0 }
 0x21e   :  { %v373_v62 = vpop.xlane.xlu1 %372  ;;  %v700_v53 = vadd.f32 %v699_v38, %v698_v10  ;;  %v496_v16 = vshll.u32 %v495_v52, 16  ;;  %v843_v45 = vsel %vm56_vm0, %v803_v35, 0.0  ;;  %v804_v6 = vmul.f32 %v1130_v13, %v1130_v13 }
 0x21f   :  { %v1637_v23 = vadd.s32 %v481_v5, %v479_v8  ;;  %v374_v21 = vcvt.f32.s32 %v373_v62  ;;  %829 = vadd.xlane.f32.xlu1 %v828_v36  ;;  %823 = vadd.xlane.f32.xlu2 %v822_v47  ;;  %v802_v47 = vmul.f32 %v1114_v9, %v1114_v9  ;;  %v806_v5 = vmul.f32 %v1148_v17, %v1148_v17 }
 0x220   :  { %v846_v8 = vsel %vm56_vm0, %v804_v6, 0.0  ;;  %v805_v13 = vmul.f32 %v1138_v15, %v1138_v15  ;;  %v510_v15 = vcvt.f32.s32 %v1534_v31  ;;  %vm764_vm7 = vcmask 654912  }
 0x221   :  { %v377_v59 = vadd.s32 %v376_v20, %v374_v21  ;;  %835 = vadd.xlane.f32.xlu0 %v834_v26  ;;  %vm526_vm8 = vcmp.eq.s32.totalorder %v1226_v63, %v1637_v23  ;;  %v852_v9 = vsel %vm56_vm0, %v806_v5, 0.0  ;;  %v390_v20 = vcvt.f32.s32 %v1516_v50 }
 0x222   :  { %v1655_v3 = vsel %vm526_vm8, 1.0, %v1038_v40  ;;  %v849_v17 = vsel %vm56_vm0, %v805_v13, 0.0  ;;  %v1693_v21 = vadd.s32 4294967240, %v1226_v63  ;;  %v511_v35 = vshll.u32 %v510_v15, 16 }
 0x223   :  { %v751_v18 = vperm.slane %v377_v59, %v1640_v41  ;;  %990 = vmatmul.msk.f32.gmra.mxu1 %vm192_vm1, %v974_v14  ;;  %vm519_vm11 = vcmp.eq.s32.totalorder %v1226_v63, %v377_v59  ;;  %v840_v14 = vsel %vm56_vm0, %v802_v47, 0.0  ;;  %v391_v38 = vshll.u32 %v390_v20, 16 }
 0x224   :  { %v493_v7 = vpop.xlane.xlu2 %492  ;;  %v975_v24 = vsel %vm519_vm11, 1.0, %v1038_v40  ;;  %v1725_v47 = vadd.s32 4294967216, %v1226_v63  ;;  %v1728_v13 = vadd.s32 4294967232, %v1226_v63  ;;  %v709_v15 = vsel %vm192_vm1, %v1562_v22, 0.0 }
 0x225   :  { %v753_v61 = vsel %vm752_vm10, %v751_v18, %v749_v34  ;;  %v494_v11 = vcvt.f32.s32 %v493_v7  ;;  %998 = vmatmul.msk.f32.gmra.mxu3 %vm192_vm1, %v1655_v3  ;;  %v701_v12 = vsel %vm192_vm1, %v975_v24, 0.0  ;;  %vm772_vm11 = vcmask 786112  }
 0x226   :  { %v702_v36 = vadd.f32 %v701_v12, %v700_v53 }
 0x227   :  { %v1665_v10 = vadd.s32 %v496_v16, %v494_v11  ;;  %838 = vadd.xlane.f32.xlu1 %v837_v46  ;;  %832 = vadd.xlane.f32.xlu2 %v831_v57  ;;  %v855_v16 = vmul.f32 2.0, %v1228_v0  ;;  %v405_v11 = vcvt.f32.s32 %v1559_v28  ;;  %v858_v0 = vmul.f32 2.0, %v1296_v55 }
 0x228   :  { %v859_v28 = vmul.f32 2.0, %v1308_v58  ;;  %v1736_v55 = vadd.s32 4294967200, %v1226_v63  ;;  %v1739_v58 = vadd.s32 4294967192, %v1226_v63 }
 0x229   :  { %844 = vadd.xlane.f32.xlu0 %v843_v45  ;;  %vm527_vm12 = vcmp.eq.s32.totalorder %v1226_v63, %v1665_v10  ;;  %v856_v45 = vmul.f32 2.0, %v1238_v25 }
 0x22a   :  { %v1677_v34 = vsel %vm527_vm12, 1.0, %v1038_v40  ;;  %vm776_vm12 = vcmask 851712  }
 0x22b   :  { %991 = vmatmul.msk.f32.gmra.mxu1 %vm192_vm1, %v975_v24 }
 0x22d   :  { %999 = vmatmul.msk.f32.gmra.mxu3 %vm192_vm1, %v1677_v34 }
 0x22f   :  { %847 = vadd.xlane.f32.xlu1 %v846_v8  ;;  %841 = vadd.xlane.f32.xlu2 %v840_v14  ;;  %v406_v14 = vshll.u32 %v405_v11, 16  ;;  %v779_v11 = vperm.slane %v1637_v23, %v1739_v58 }
 0x231   :  { %853 = vadd.xlane.f32.xlu0 %v852_v9 }
 0x237   :  { %850 = vadd.xlane.f32.xlu2 %v849_v17 }
 0x272   :  { %v626_v62 = vpop.f32.mrf.mxu1 }
 0x273   :  { %674 = vst.msk [vmem:[%s1897_s4] sm:$0xff] %vm56_vm0, %v626_v62  ;;  %v707_v62 = vsel %vm192_vm1, %v1527_v48, 0.0 }
 0x274   :  { %v388_v26 = vpop.xlane.xlu0 %387 }
 0x275   :  { %v389_v53 = vcvt.f32.s32 %v388_v26 }
 0x277   :  { %v392_v51 = vadd.s32 %v391_v38, %v389_v53 }
 0x279   :  { %v755_v44 = vperm.slane %v392_v51, %v1693_v21  ;;  %vm520_vm15 = vcmp.eq.s32.totalorder %v1226_v63, %v392_v51  ;;  %v1750_v51 = vadd.s32 4294967184, %v1226_v63 }
 0x27a   :  { %v629_v50 = vpop.f32.mrf.mxu1  ;;  %v508_v52 = vpop.xlane.xlu1 %507  ;;  %v976_v59 = vsel %vm520_vm15, 1.0, %v1038_v40  ;;  %vm780_vm15 = vcmask 917312  }
 0x27b   :  { %v757_v18 = vsel %vm756_vm14, %v755_v44, %v753_v61  ;;  %675 = vst.msk [vmem:[%s1897_s4 + $0x8] sm:$0xff] %vm56_vm0, %v629_v50  ;;  %v509_v7 = vcvt.f32.s32 %v508_v52  ;;  %992 = vmatmul.msk.f32.gmra.mxu1 %vm192_vm1, %v976_v59  ;;  %v703_v31 = vsel %vm192_vm1, %v976_v59, 0.0  ;;  %v1713_v61 = vadd.s32 4294967224, %v1226_v63 }
 0x27c   :  { %v704_v46 = vadd.f32 %v703_v31, %v702_v36  ;;  %v809_v57 = vpop.xlane.xlu0 %808  ;;  %v857_v36 = vmul.f32 2.0, %v1269_v27  ;;  %v1733_v27 = vadd.s32 4294967208, %v1226_v63  ;;  %v1765_v59 = vadd.s32 4294967176, %v1226_v63 }
 0x27d   :  { %v1706_v24 = vadd.s32 %v511_v35, %v509_v7  ;;  %v871_v6 = vadd.f32 %v855_v16, %v809_v57  ;;  %v763_v17 = vperm.slane %v1518_v1, %v1713_v61  ;;  %v767_v1 = vperm.slane %v1547_v32, %v1725_v47 }
 0x27e   :  { %v775_v32 = vperm.slane %v1606_v2, %v1736_v55 }
 0x27f   :  { %vm528_vm3 = vcmp.eq.s32.totalorder %v1226_v63, %v1706_v24  ;;  %v903_v26 = vperm.slane %v871_v6, %v1226_v63 }
 0x280   :  { %v1716_v12 = vsel %vm528_vm3, 1.0, %v1038_v40  ;;  %vm784_vm3 = vcmask 982912  }
 0x281   :  { %1000 = vmatmul.msk.f32.gmra.mxu3 %vm192_vm1, %v1716_v12 }
 0x282   :  { %v812_v5 = vpop.xlane.xlu1 %811  ;;  %v403_v8 = vpop.xlane.xlu2 %402 }
 0x283   :  { %v872_v9 = vadd.f32 %v856_v45, %v812_v5  ;;  %v404_v25 = vcvt.f32.s32 %v403_v8 }
 0x284   :  { %v818_v20 = vpop.xlane.xlu0 %817 }
 0x285   :  { %v904_v38 = vperm.slane %v872_v9, %v1504_v60  ;;  %v407_v53 = vadd.s32 %v406_v14, %v404_v25  ;;  %v771_v60 = vperm.slane %v1580_v33, %v1733_v27  ;;  %v874_v7 = vadd.f32 %v858_v0, %v818_v20 }
 0x286   :  { %v653_v44 = vpop.f32.mrf.mxu3  ;;  %v783_v0 = vperm.slane %v1665_v10, %v1750_v51  ;;  %v711_v9 = vsel %vm192_vm1, %v1593_v39, 0.0  ;;  %v713_v39 = vsel %vm192_vm1, %v1627_v49, 0.0 }
 0x287   :  { %v905_v50 = vsel %vm732_vm4, %v904_v38, %v903_v26  ;;  %v759_v48 = vperm.slane %v407_v53, %v1728_v13  ;;  %683 = vst.msk [vmem:[%s1897_s4 + $0x48] sm:$0xff] %vm56_vm0, %v653_v44  ;;  %vm521_vm8 = vcmp.eq.s32.totalorder %v1226_v63, %v407_v53  ;;  %vm768_vm4 = vcmask 720512  }
 0x288   :  { %v632_v22 = vpop.f32.mrf.mxu1  ;;  %v977_v52 = vsel %vm521_vm8, 1.0, %v1038_v40  ;;  %vm788_vm8 = vcmask 1048512   ;;  %v860_v38 = vmul.f32 2.0, %v1339_v37  ;;  %v715_v37 = vsel %vm192_vm1, %v1655_v3, 0.0 }
 0x289   :  { %v761_v35 = vsel %vm760_vm6, %v759_v48, %v757_v18  ;;  %676 = vst.msk [vmem:[%s1897_s4 + $0x10] sm:$0xff] %vm56_vm0, %v632_v22  ;;  %993 = vmatmul.msk.f32.gmra.mxu1 %vm192_vm1, %v977_v52  ;;  %v705_v33 = vsel %vm192_vm1, %v977_v52, 0.0  ;;  %v717_v48 = vsel %vm192_vm1, %v1677_v34, 0.0  ;;  %v719_v3 = vsel %vm192_vm1, %v1716_v12, 0.0 }
 0x28a   :  { %v765_v2 = vsel %vm764_vm7, %v763_v17, %v761_v35  ;;  %v706_v40 = vadd.f32 %v705_v33, %v704_v46  ;;  %v821_v31 = vpop.xlane.xlu1 %820  ;;  %v815_v57 = vpop.xlane.xlu2 %814  ;;  %v861_v17 = vmul.f32 2.0, %v1363_v56  ;;  %v864_v33 = vmul.f32 2.0, %v1248_v29 }
 0x28b   :  { %v875_v63 = vadd.f32 %v859_v28, %v821_v31  ;;  %v873_v16 = vadd.f32 %v857_v36, %v815_v57  ;;  %v769_v18 = vsel %vm768_vm4, %v767_v1, %v765_v2  ;;  %v787_v36 = vperm.slane %v1706_v24, %v1765_v59  ;;  %v1913_v57 = vld [vmem:[#allocation10_spill] sm:$0xff] }
 0x28c   :  { %v708_v45 = vadd.f32 %v707_v62, %v706_v40  ;;  %v827_v6 = vpop.xlane.xlu0 %826  ;;  %v773_v5 = vsel %vm772_vm11, %v771_v60, %v769_v18  ;;  %v908_v28 = vperm.slane %v874_v7, %v1566_v30  ;;  %vm727_vm1 = vcmask 57344  }
 0x28d   :  { %v906_v46 = vperm.slane %v873_v16, %v1537_v43  ;;  %v777_v8 = vsel %vm776_vm12, %v775_v32, %v773_v5  ;;  %v910_v25 = vperm.slane %v875_v63, %v1598_v4  ;;  %v877_v53 = vadd.f32 %v861_v17, %v827_v6 }
 0x28e   :  { %v710_v14 = vadd.f32 %v709_v15, %v708_v45  ;;  %v781_v23 = vsel %vm780_vm15, %v779_v11, %v777_v8  ;;  %v862_v32 = vmul.f32 2.0, %v1397_v54  ;;  %v863_v54 = vmul.f32 2.0, %v1913_v57 }
 0x28f   :  { %v907_v10 = vsel %vm736_vm9, %v906_v46, %v905_v50  ;;  %v785_v43 = vsel %vm784_vm3, %v783_v0, %v781_v23  ;;  %v914_v52 = vperm.slane %v877_v53, %v1640_v41 }
 0x290   :  { %v712_v20 = vadd.f32 %v711_v9, %v710_v14  ;;  %v909_v62 = vsel %vm740_vm13, %v908_v28, %v907_v10  ;;  %v635_v24 = vpop.f32.mrf.mxu1  ;;  %v656_v26 = vpop.f32.mrf.mxu3  ;;  %v789_v30 = vsel %vm788_vm8, %v787_v36, %v785_v43  ;;  %v1914_v28 = vld [vmem:[#allocation6_spill] sm:$0xff] }
 0x291   :  { %677 = vst.msk [vmem:[%s1897_s4 + $0x18] sm:$0xff] %vm56_vm0, %v635_v24  ;;  %v911_v4 = vsel %vm744_vm2, %v910_v25, %v909_v62  ;;  %v867_v14 = vmul.f32 2.0, %v1914_v28 }
 0x292   :  { %v714_v56 = vadd.f32 %v713_v39, %v712_v20  ;;  %684 = vst.msk [vmem:[%s1897_s4 + $0x50] sm:$0xff] %vm56_vm0, %v656_v26  ;;  %v830_v1 = vpop.xlane.xlu1 %829  ;;  %v824_v15 = vpop.xlane.xlu2 %823 }
 0x293   :  { %v876_v49 = vadd.f32 %v860_v38, %v824_v15  ;;  %790 = vst [vmem:[%s1898_s5] sm:$0x1] %v789_v30  ;;  %v878_v7 = vadd.f32 %v862_v32, %v830_v1  ;;  %v1917_v15 = vld [vmem:[#allocation9_spill] sm:$0xff] }
 0x294   :  { %v716_v44 = vadd.f32 %v715_v37, %v714_v56  ;;  %v836_v50 = vpop.xlane.xlu0 %835  ;;  %v870_v37 = vmul.f32 2.0, %v1917_v15 }
 0x295   :  { %v912_v60 = vperm.slane %v876_v49, %v1603_v19  ;;  %v865_v19 = vmul.f32 2.0, %v1267_v42  ;;  %v880_v12 = vadd.f32 %v864_v33, %v836_v50  ;;  %v916_v42 = vperm.slane %v878_v7, %v1693_v21  ;;  %v1915_v21 = vld [vmem:[#allocation5_spill] sm:$0xff] }
 0x296   :  { %v718_v22 = vadd.f32 %v717_v48, %v716_v44  ;;  %v866_v43 = vmul.f32 2.0, %v1915_v21  ;;  %v1918_v48 = vld [vmem:[#allocation8_spill] sm:$0xff] }
 0x297   :  { %v913_v35 = vsel %vm748_vm5, %v912_v60, %v911_v4  ;;  %v920_v0 = vperm.slane %v880_v12, %v1713_v61  ;;  %v869_v60 = vmul.f32 2.0, %v1918_v48 }
 0x298   :  { %v720_v2 = vadd.f32 %v719_v3, %v718_v22  ;;  %v915_v40 = vsel %vm752_vm10, %v914_v52, %v913_v35  ;;  %v638_v31 = vpop.f32.mrf.mxu1  ;;  %v659_v34 = vpop.f32.mrf.mxu3 }
 0x299   :  { %678 = vst.msk [vmem:[%s1897_s4 + $0x20] sm:$0xff] %vm56_vm0, %v638_v31  ;;  %v917_v46 = vsel %vm756_vm14, %v916_v42, %v915_v40 }
 0x29a   :  { %v721_v41 = vrot.slane %v720_v2, 4  ;;  %685 = vst.msk [vmem:[%s1897_s4 + $0x58] sm:$0xff] %vm56_vm0, %v659_v34  ;;  %v839_v29 = vpop.xlane.xlu1 %838  ;;  %v833_v63 = vpop.xlane.xlu2 %832 }
 0x29b   :  { %v881_v16 = vadd.f32 %v865_v19, %v839_v29  ;;  %v879_v18 = vadd.f32 %v863_v54, %v833_v63 }
 0x29c   :  { %v722_v11 = vadd.f32 %v721_v41, %v720_v2  ;;  %v845_v6 = vpop.xlane.xlu0 %844 }
 0x29d   :  { %v918_v45 = vperm.slane %v879_v18, %v1728_v13  ;;  %v922_v8 = vperm.slane %v881_v16, %v1725_v47  ;;  %v1916_v13 = vld [vmem:[#allocation7_spill] sm:$0xff]  ;;  %v883_v20 = vadd.f32 %v867_v14, %v845_v6 }
 0x29e   :  { %v723_v5 = vrot.slane %v722_v11, 2  ;;  %v868_v17 = vmul.f32 2.0, %v1916_v13 }
 0x29f   :  { %v919_v36 = vsel %vm760_vm6, %v918_v45, %v917_v46  ;;  %v926_v4 = vperm.slane %v883_v20, %v1736_v55 }
 0x2a0   :  { %v724_v23 = vadd.f32 %v723_v5, %v722_v11  ;;  %v921_v9 = vsel %vm764_vm7, %v920_v0, %v919_v36  ;;  %v641_v25 = vpop.f32.mrf.mxu1  ;;  %v662_v10 = vpop.f32.mrf.mxu3 }
 0x2a1   :  { %679 = vst.msk [vmem:[%s1897_s4 + $0x28] sm:$0xff] %vm56_vm0, %v641_v25  ;;  %v923_v61 = vsel %vm768_vm4, %v922_v8, %v921_v9 }
 0x2a2   :  { %v725_v47 = vrot.slane %v724_v23, 1  ;;  %686 = vst.msk [vmem:[%s1897_s4 + $0x60] sm:$0xff] %vm56_vm0, %v662_v10  ;;  %v848_v62 = vpop.xlane.xlu1 %847  ;;  %v842_v24 = vpop.xlane.xlu2 %841 }
 0x2a3   :  { %v884_v26 = vadd.f32 %v868_v17, %v848_v62  ;;  %v882_v30 = vadd.f32 %v866_v43, %v842_v24 }
 0x2a4   :  { %v726_v38 = vadd.f32 %v725_v47, %v724_v23  ;;  %v854_v1 = vpop.xlane.xlu0 %853 }
 0x2a5   :  { %v924_v39 = vperm.slane %v882_v30, %v1733_v27  ;;  %v928_v56 = vperm.slane %v884_v26, %v1739_v58  ;;  %v886_v55 = vadd.f32 %v870_v37, %v854_v1 }
 0x2a6   :  { %728 = vst.msk [vmem:[%s1899_s6] sm:$0x1] %vm727_vm1, %v726_v38 }
 0x2a7   :  { %v925_v53 = vsel %vm772_vm11, %v924_v39, %v923_v61  ;;  %v932_v52 = vperm.slane %v886_v55, %v1765_v59 }
 0x2a8   :  { %v927_v49 = vsel %vm776_vm12, %v926_v4, %v925_v53  ;;  %v644_v44 = vpop.f32.mrf.mxu1  ;;  %v665_v50 = vpop.f32.mrf.mxu3 }
 0x2a9   :  { %680 = vst.msk [vmem:[%s1897_s4 + $0x30] sm:$0xff] %vm56_vm0, %v644_v44  ;;  %v929_v27 = vsel %vm780_vm15, %v928_v56, %v927_v49 }
 0x2aa   :  { %687 = vst.msk [vmem:[%s1897_s4 + $0x68] sm:$0xff] %vm56_vm0, %v665_v50  ;;  %v851_v58 = vpop.xlane.xlu2 %850 }
 0x2ab   :  { %v885_v32 = vadd.f32 %v869_v60, %v851_v58 }
 0x2ad   :  { %v930_v22 = vperm.slane %v885_v32, %v1750_v51 }
 0x2af   :  { %v931_v3 = vsel %vm784_vm3, %v930_v22, %v929_v27 }
 0x2b0   :  { %v933_v35 = vsel %vm788_vm8, %v932_v52, %v931_v3  ;;  %v668_v33 = vpop.f32.mrf.mxu3 }
 0x2b1   :  { %935 = vst [vmem:[%s1900_s7] sm:$0x1] %v933_v35 }
 0x2b2   :  { %688 = vst.msk [vmem:[%s1897_s4 + $0x70] sm:$0xff] %vm56_vm0, %v668_v33 }
 0x2f8   :  { %v647_v2 = vpop.f32.mrf.mxu1 }
 0x2f9   :  { %681 = vst.msk [vmem:[%s1897_s4 + $0x38] sm:$0xff] %vm56_vm0, %v647_v2 }
 0x304   :  { %v671_v51 = vpop.f32.mrf.mxu3 }
 0x305   :  { %689 = vst.msk [vmem:[%s1897_s4 + $0x78] sm:$0xff] %vm56_vm0, %v671_v51 }
 0x306   :  { %v650_v59 = vpop.f32.mrf.mxu1 }
 0x307   :  { %682 = vst.msk [vmem:[%s1897_s4 + $0x40] sm:$0xff] %vm56_vm0, %v650_v59 }
 0x308   :  { %952 = vsyncpa [#allocation3], 1 }

</bundles_post_ra>
